<compile_context>
chip_gen: v7x
topology: tpu7x:2x2x1
jax: 0.10.0
libtpu: 0.0.40
codegen_flags: <defaults>
</compile_context>

<pallas_src>
import jax
import jax.numpy as jnp
from jax.experimental import pallas as pl
from jax.experimental.pallas import tpu as pltpu

EPS = 1e-5


def _round_up(x, m):
    return ((x + m - 1) // m) * m


# ---------------------------------------------------------------------------
# Kernel 1: im2col matmul (bf16 x bf16 -> f32 on MXU), bf16 store of the conv
# intermediate, plus per-N-tile BN partial stats (sum / sum of squares) taken
# from the f32 accumulator.  grid = (N_tiles,), weight block grid-resident.
# ---------------------------------------------------------------------------
def deconv_matmul_kernel(g_ref, w_ref, out_ref, stats_ref):
    acc = jnp.dot(g_ref[...], w_ref[...],
                  preferred_element_type=jnp.float32)        # [tile_n, Cout_pad] f32
    out_ref[...] = acc.astype(out_ref.dtype)                  # bf16 intermediate

    # Fused single-pass BN partials.  Padded rows of the gathered slab are
    # exactly zero (sentinel gather row, no bias), so they contribute nothing.
    stats_ref[0:1, :] = jnp.sum(acc, axis=0, keepdims=True)
    stats_ref[1:2, :] = jnp.sum(acc * acc, axis=0, keepdims=True)
    stats_ref[2:8, :] = jnp.zeros((6, acc.shape[1]), jnp.float32)


# ---------------------------------------------------------------------------
# Kernel 2: elementwise BatchNorm apply (pre-folded scale/shift) + ReLU.
# ---------------------------------------------------------------------------
def bn_relu_kernel(x_ref, scale_ref, shift_ref, out_ref):
    x = x_ref[...].astype(jnp.float32)
    y = x * scale_ref[...] + shift_ref[...]
    out_ref[...] = jnp.maximum(y, 0.0).astype(out_ref.dtype)


def build_gather_indices(coords, ks):
    """Index-based kernel map for the stride-1 transposed sparse conv.

    gather_idx[k, o] = i  such that  coords[o] == coords[i] + offset_k
    (same batch), else N (sentinel -> zero row).  Coordinates are unique per
    batch, so there is at most one match per (k, o).
    """
    # TODO(synk): for realistic point counts this O(K*N^2) comparison should be
    # replaced by torchsparse's hash-map rulebook construction; the Pallas
    # kernels themselves only ever see the O(K*N) index table.
    r = ks // 2
    offs = [(dx, dy, dz)
            for dx in range(-r, r + 1)
            for dy in range(-r, r + 1)
            for dz in range(-r, r + 1)]
    offsets = jnp.array(offs, dtype=coords.dtype)                 # [K, 3]
    xyz = coords[:, 1:]                                            # [N, 3]
    b = coords[:, 0]
    n = xyz.shape[0]
    target = xyz[None, :, :] - offsets[:, None, :]                 # [K, N, 3]
    match = jnp.all(target[:, :, None, :] == xyz[None, None, :, :], axis=-1)
    match = match & (b[None, :, None] == b[None, None, :])         # [K, N, N]
    has = jnp.any(match, axis=-1)                                  # [K, N]
    idx = jnp.argmax(match, axis=-1)                               # [K, N]
    return jnp.where(has, idx, n).astype(jnp.int32)


def basic_deconvolution_block(feats, coords, weight, gamma, beta, *,
                              ks=3, tile_n=256, tile_n_bn=1024):
    """feats [N, Cin] f32, coords [N, 4] int32, weight [K^3, Cin, Cout],
    gamma/beta [1, Cout] -> [N, Cout] f32 (training-mode BN + ReLU)."""
    n, cin = feats.shape
    k3, _, cout = weight.shape

    # ---- index-based kernel map + im2col gather (wrapper-side, O(K*N*Cin))
    gather_idx = build_gather_indices(coords, ks)                  # [K, N]
    feats_bf = feats.astype(jnp.bfloat16)
    feats_z = jnp.concatenate(
        [feats_bf, jnp.zeros((1, cin), jnp.bfloat16)], axis=0)     # zero sentinel row
    gathered = feats_z[gather_idx]                                 # [K, N, Cin]
    gathered = jnp.transpose(gathered, (1, 0, 2)).reshape(n, k3 * cin)

    # ---- lane-dense padding (Cout 32->128, contraction 432->512), bf16 ops
    kc = k3 * cin
    kc_pad = _round_up(kc, 128)
    n_pad = _round_up(n, tile_n)
    cout_pad = _round_up(cout, 128)

    gathered = jnp.pad(gathered, ((0, n_pad - n), (0, kc_pad - kc)))
    w_flat = jnp.pad(weight.reshape(kc, cout),
                     ((0, kc_pad - kc), (0, cout_pad - cout))).astype(jnp.bfloat16)

    n_tiles = n_pad // tile_n

    # BN/ReLU tile: largest multiple of tile_n that divides n_pad, <= tile_n_bn
    bn_factor = 1
    for f in range(max(1, min(n_tiles, tile_n_bn // tile_n)), 0, -1):
        if n_tiles % f == 0:
            bn_factor = f
            break
    tile_n_bn_eff = tile_n * bn_factor
    bn_tiles = n_pad // tile_n_bn_eff

    compiler_params = pltpu.CompilerParams(
        dimension_semantics=("parallel",),
        vmem_limit_bytes=32 * 1024 * 1024)   # explicit budget (v7x: 64 MiB VMEM)

    cost = pl.CostEstimate(
        flops=2 * n_pad * kc_pad * cout_pad,
        transcendentals=0,
        bytes_accessed=(gathered.size * 2 + w_flat.size * 2
                        + n_pad * cout_pad * 2 + n_tiles * 8 * cout_pad * 4))

    conv, stats = pl.pallas_call(
        deconv_matmul_kernel,
        out_shape=(jax.ShapeDtypeStruct((n_pad, cout_pad), jnp.bfloat16),
                   jax.ShapeDtypeStruct((n_tiles * 8, cout_pad), jnp.float32)),
        grid_spec=pltpu.PrefetchScalarGridSpec(
            num_scalar_prefetch=0,
            grid=(n_tiles,),
            in_specs=[
                pl.BlockSpec((tile_n, kc_pad), lambda i: (i, 0)),
                # full padded weight, grid-resident (same block every step)
                pl.BlockSpec((kc_pad, cout_pad), lambda i: (0, 0)),
            ],
            out_specs=[
                pl.BlockSpec((tile_n, cout_pad), lambda i: (i, 0)),
                pl.BlockSpec((8, cout_pad), lambda i: (i, 0)),
            ],
        ),
        compiler_params=compiler_params,
        cost_estimate=cost,
    )(gathered, w_flat)

    # ---- combine per-tile BN partials (training-mode, biased variance).
    # Zero-padded rows/cols contribute nothing to sum/sumsq; divide by real N.
    stats = stats.reshape(n_tiles, 8, cout_pad)
    total_sum = jnp.sum(stats[:, 0, :], axis=0)
    total_sumsq = jnp.sum(stats[:, 1, :], axis=0)
    mean = total_sum / n
    var = total_sumsq / n - mean * mean
    inv = jax.lax.rsqrt(var + EPS)
    gamma_p = jnp.pad(gamma.astype(jnp.float32), ((0, 0), (0, cout_pad - cout)))
    beta_p = jnp.pad(beta.astype(jnp.float32), ((0, 0), (0, cout_pad - cout)))
    scale = gamma_p * inv[None, :]                                 # [1, Cout_pad]
    shift = beta_p - mean[None, :] * scale                         # [1, Cout_pad]

    y = pl.pallas_call(
        bn_relu_kernel,
        out_shape=jax.ShapeDtypeStruct((n_pad, cout_pad), feats.dtype),
        grid_spec=pltpu.PrefetchScalarGridSpec(
            num_scalar_prefetch=0,
            grid=(bn_tiles,),
            in_specs=[
                pl.BlockSpec((tile_n_bn_eff, cout_pad), lambda i: (i, 0)),
                pl.BlockSpec((1, cout_pad), lambda i: (0, 0)),
                pl.BlockSpec((1, cout_pad), lambda i: (0, 0)),
            ],
            out_specs=pl.BlockSpec((tile_n_bn_eff, cout_pad), lambda i: (i, 0)),
        ),
        compiler_params=compiler_params,
    )(conv, scale, shift)

    return y[:n, :cout]


# ---------------------------------------------------------------------------
# Reference (pure JAX, dense one-hot kernel map -- used for verification only)
# ---------------------------------------------------------------------------
def build_scatter_matrices(coords, ks):
    r = ks // 2
    offs = [(dx, dy, dz)
            for dx in range(-r, r + 1)
            for dy in range(-r, r + 1)
            for dz in range(-r, r + 1)]
    offsets = jnp.array(offs, dtype=coords.dtype)                  # [K, 3]
    xyz = coords[:, 1:]
    b = coords[:, 0]
    shifted = xyz[None, :, :] + offsets[:, None, :]                # [K, N_in, 3]
    same_xyz = jnp.all(
        xyz[None, :, None, :] == shifted[:, None, :, :], axis=-1)  # [K, N_o, N_i]
    same_b = (b[:, None] == b[None, :])[None, :, :]
    return (same_xyz & same_b).astype(jnp.float32)


def reference(feats, coords, weight, gamma, beta, ks):
    scatter = build_scatter_matrices(coords, ks)
    acc = jnp.einsum("koi,ic,kcd->od", scatter, feats, weight)
    mean = jnp.mean(acc, axis=0, keepdims=True)
    var = jnp.mean((acc - mean) ** 2, axis=0, keepdims=True)
    y = (acc - mean) * jax.lax.rsqrt(var + EPS) * gamma + beta
    return jnp.maximum(y, 0.0)


if __name__ == "__main__":
    # BasicDeconvolutionBlock(inc=16, outc=32, ks=3, stride=1);
    # 2 batches x dense 4x4x4 voxel blocks -> N = 128 points.
    inc, outc, ks = 16, 32, 3
    k3 = ks ** 3

    g = jnp.arange(4, dtype=jnp.int32)
    xx, yy, zz = jnp.meshgrid(g, g, g, indexing="ij")
    xyz = jnp.stack([xx.ravel(), yy.ravel(), zz.ravel()], axis=-1)   # [64, 3]
    coords = jnp.concatenate([
        jnp.concatenate([jnp.zeros((64, 1), jnp.int32), xyz], axis=-1),
        jnp.concatenate([jnp.ones((64, 1), jnp.int32), xyz], axis=-1),
    ], axis=0)                                                        # [128, 4]
    n = coords.shape[0]

    key = jax.random.PRNGKey(0)
    kf, kw = jax.random.split(key)
    feats = jax.random.normal(kf, (n, inc), dtype=jnp.float32)
    weight = jax.random.normal(kw, (k3, inc, outc), dtype=jnp.float32) * 0.1
    gamma = jnp.ones((1, outc), dtype=jnp.float32)   # PyTorch BN init
    beta = jnp.zeros((1, outc), dtype=jnp.float32)

    out = basic_deconvolution_block(feats, coords, weight, gamma, beta, ks=ks)
    out = jax.block_until_ready(out)

    # Reference at the same bf16 operand precision the kernel uses, so the
    # check isolates kernel correctness from the deliberate bf16 casts
    # (operands + bf16 conv intermediate).
    feats_q = feats.astype(jnp.bfloat16).astype(jnp.float32)
    weight_q = weight.astype(jnp.bfloat16).astype(jnp.float32)
    ref = reference(feats_q, coords, weight_q, gamma, beta, ks)
    assert jnp.allclose(out, ref, atol=1e-2, rtol=1e-2), "mismatch vs reference"

    # TODO(synk): stride>1 transposed conv (coordinate upsampling), BN
    # running-stat tracking, and torchsparse's exact mirrored-offset weight
    # pairing for transposed Conv3d are not modeled; only the stride=1 forward
    # path (offset k paired with W[k], matching the in-file reference) is.
    print("KERNEL_OK")
</pallas_src>

<mosaic_0001>
module attributes {stable_mosaic.version = 11 : i64} {
  func.func @deconv_matmul_kernel(%arg0: i32, %arg1: memref<256x512xbf16, #tpu.memory_space<vmem>>, %arg2: memref<512x128xbf16, #tpu.memory_space<vmem>>, %arg3: memref<256x128xbf16, #tpu.memory_space<vmem>>, %arg4: memref<8x128xf32, #tpu.memory_space<vmem>>) attributes {dimension_semantics = [#tpu.dimension_semantics<parallel>], iteration_bounds = array<i64: 1>, scalar_prefetch = 0 : i64, scratch_operands = 0 : i64, tpu.core_type = #tpu.core_type<tc>, window_params = [{transform_indices = @transform_0, window_bounds = array<i64: 256, 512>}, {pipeline_mode = #tpu.pipeline_mode<synchronous>, transform_indices = @transform_1, window_bounds = array<i64: 512, 128>}, {transform_indices = @transform_2, window_bounds = array<i64: 256, 128>}, {transform_indices = @transform_3, window_bounds = array<i64: 8, 128>}]} {
    %c0 = arith.constant 0 : index
    %c0_0 = arith.constant 0 : index
    %0 = vector.load %arg1[%c0, %c0_0] : memref<256x512xbf16, #tpu.memory_space<vmem>>, vector<256x512xbf16>
    %c0_1 = arith.constant 0 : index
    %c0_2 = arith.constant 0 : index
    %1 = vector.load %arg2[%c0_1, %c0_2] : memref<512x128xbf16, #tpu.memory_space<vmem>>, vector<512x128xbf16>
    %cst = arith.constant dense<0.000000e+00> : vector<256x128xf32>
    %2 = tpu.matmul %0, %1, %cst {dimension_numbers = #tpu.dot_dimension_numbers<[1], [0], [0], [1], [0, 0, 1, 1], [], []>} : vector<256x512xbf16>, vector<512x128xbf16>, vector<256x128xf32> -> vector<256x128xf32>
    %3 = arith.truncf %2 : vector<256x128xf32> to vector<256x128xbf16>
    %c0_3 = arith.constant 0 : index
    %c0_4 = arith.constant 0 : index
    %4 = vector.load %arg3[%c0_3, %c0_4] : memref<256x128xbf16, #tpu.memory_space<vmem>>, vector<256x128xbf16>
    tpu.vector_store %arg3[%c0_3, %c0_4], %3 {strides = array<i32>} : memref<256x128xbf16, #tpu.memory_space<vmem>>, vector<256x128xbf16>,
    %cst_5 = arith.constant dense<0.000000e+00> : vector<128xf32>
    %5 = vector.multi_reduction <add>, %2, %cst_5 [0] : vector<256x128xf32> to vector<128xf32>
    %6 = vector.shape_cast %5 : vector<128xf32> to vector<1x128xf32>
    %c0_6 = arith.constant 0 : index
    %c0_7 = arith.constant 0 : index
    %7 = vector.load %arg4[%c0_6, %c0_7] : memref<8x128xf32, #tpu.memory_space<vmem>>, vector<1x128xf32>
    tpu.vector_store %arg4[%c0_6, %c0_7], %6 {strides = array<i32>} : memref<8x128xf32, #tpu.memory_space<vmem>>, vector<1x128xf32>,
    %8 = arith.mulf %2, %2 : vector<256x128xf32>
    %cst_8 = arith.constant dense<0.000000e+00> : vector<128xf32>
    %9 = vector.multi_reduction <add>, %8, %cst_8 [0] : vector<256x128xf32> to vector<128xf32>
    %10 = vector.shape_cast %9 : vector<128xf32> to vector<1x128xf32>
    %c1 = arith.constant 1 : index
    %c0_9 = arith.constant 0 : index
    %11 = vector.load %arg4[%c1, %c0_9] : memref<8x128xf32, #tpu.memory_space<vmem>>, vector<1x128xf32>
    tpu.vector_store %arg4[%c1, %c0_9], %10 {strides = array<i32>} : memref<8x128xf32, #tpu.memory_space<vmem>>, vector<1x128xf32>,
    %cst_10 = arith.constant 0.000000e+00 : f32
    %12 = vector.broadcast %cst_10 : f32 to vector<6x128xf32>
    %c2 = arith.constant 2 : index
    %c0_11 = arith.constant 0 : index
    %13 = vector.load %arg4[%c2, %c0_11] : memref<8x128xf32, #tpu.memory_space<vmem>>, vector<6x128xf32>
    tpu.vector_store %arg4[%c2, %c0_11], %12 {strides = array<i32>} : memref<8x128xf32, #tpu.memory_space<vmem>>, vector<6x128xf32>,
    return
  }
  func.func @transform_0(%arg0: i32) -> (i32, i32) {
    %c0_i32 = arith.constant 0 : i32
    %c0_i32_0 = arith.constant 0 : i32
    return %arg0, %c0_i32 : i32, i32
  }
  func.func @transform_1(%arg0: i32) -> (i32, i32) {
    %c0_i32 = arith.constant 0 : i32
    %c0_i32_0 = arith.constant 0 : i32
    %c0_i32_1 = arith.constant 0 : i32
    return %c0_i32, %c0_i32_0 : i32, i32
  }
  func.func @transform_2(%arg0: i32) -> (i32, i32) {
    %c0_i32 = arith.constant 0 : i32
    %c0_i32_0 = arith.constant 0 : i32
    return %arg0, %c0_i32 : i32, i32
  }
  func.func @transform_3(%arg0: i32) -> (i32, i32) {
    %c0_i32 = arith.constant 0 : i32
    %c0_i32_0 = arith.constant 0 : i32
    return %arg0, %c0_i32 : i32, i32
  }
}

</mosaic_0001>

<bundles_post_ra>
// kernel: tpu_custom_call.1
= control target key start
LH: loop header
LB: loop body
LE: loop exit
PB: predicated region body
PF: predicated region fallthrough
CT: control target
= control target key end

     0   :  { %9 = vsyncpa [#allocation3], 0  ;;  %s2102_s0 = inlined_call_operand.hbm [shape: bf16[256,512], index: 0, kind: input, shape index: {}]   ;;  %s2103_s1 = inlined_call_operand.hbm [shape: bf16[512,128], index: 1, kind: input, shape index: {}]   ;;  %s2104_s2 = inlined_call_operand.hbm [shape: bf16[256,128], index: 2, kind: output, shape index: {0}]   ;;  %s2105_s3 = inlined_call_operand.hbm [shape: f32[8,128], index: 3, kind: output, shape index: {1}]  }
   0x1   :  { %10 = vsyncpa [#allocation6], 0 }
   0x2   :  { %11 = vsyncpa [#allocation4], 0 }
   0x3   :  { %12 = vsyncpa [#allocation9], 0  ;;  %s2019_s12 = smov [#allocation2]   ;;  %s1923_s16 = scalar_lea.hbm %s2102_s0, 8192 }
   0x4   :  { %s18_s13 = sshll.u32 %s2019_s12, 4  ;;  %p1924_p0 = scmp.ne.s32.totalorder %s2102_s0, %s1923_s16  ;;  %s19_s13 = int_to_ptr.vmem [resolvable:$true] %s18_s13 }
   0x5   :  { %p1927_p1 = scmp.lt.u32.totalorder %s1923_s16, %s2102_s0 }
   0x7   :  { %p1929_p2 = pnand %p1927_p1, %p1924_p0 }
   0x9   :  { %1932 = shalt.err (!%p1929_p2)
}
   0xa   :  { %s1933_s21 = scalar_lea.vmem %s19_s13, 8192  ;;  %p1938_p4 = scmp.lt.s32.totalorder %s19_s13, %s19_s13 }
   0xb   :  { %p1934_p3 = scmp.ne.s32.totalorder %s19_s13, %s1933_s21  ;;  %p1939_p5 = scmp.lt.s32.totalorder %s1933_s21, %s1933_s21 }
   0xd   :  { %p1940_p6 = por %p1939_p5, %p1938_p4 }
   0xf   :  { %p1941_p7 = pnand %p1940_p6, %p1934_p3 }
  0x11   :  { %1944 = shalt.err (!%p1941_p7)
}
  0x12   :  { %s2020_s22 = smov 256   ;;  %s2021_s23 = smov 16  }
  0x13   :  { %24 = dma.hbm_to_vmem [thread:$0]  %s2102_s0, 8192, %s19_s13, [#allocation3], %s2020_s22, %s2020_s22, %s2021_s23  }
  0x14   :  { %s2022_s26 = smov [#allocation5]   ;;  %s1945_s30 = scalar_lea.hbm %s2103_s1, 4096 }
  0x15   :  { %s30_s27 = sshll.u32 %s2022_s26, 4  ;;  %p1946_p8 = scmp.ne.s32.totalorder %s2103_s1, %s1945_s30  ;;  %s31_s27 = int_to_ptr.vmem [resolvable:$true] %s30_s27 }
  0x16   :  { %p1949_p9 = scmp.lt.u32.totalorder %s1945_s30, %s2103_s1 }
  0x18   :  { %p1951_p10 = pnand %p1949_p9, %p1946_p8 }
  0x1a   :  { %1954 = shalt.err (!%p1951_p10)
}
  0x1b   :  { %s1955_s8 = scalar_lea.vmem %s31_s27, 4096  ;;  %p1960_p12 = scmp.lt.s32.totalorder %s31_s27, %s31_s27 }
  0x1c   :  { %p1956_p11 = scmp.ne.s32.totalorder %s31_s27, %s1955_s8  ;;  %p1961_p13 = scmp.lt.s32.totalorder %s1955_s8, %s1955_s8 }
  0x1e   :  { %p1962_p0 = por %p1961_p13, %p1960_p12 }
  0x20   :  { %p1963_p1 = pnand %p1962_p0, %p1956_p11 }
  0x22   :  { %1966 = shalt.err (!%p1963_p1)
}
  0x23   :  { %s2023_s0 = smov 64   ;;  %s2024_s9 = smov 4  }
  0x24   :  { %36 = dma.hbm_to_vmem [thread:$0]  %s2103_s1, 4096, %s31_s27, [#allocation6], %s2023_s0, %s2023_s0, %s2024_s9  }
  0x25   :  { %2011 = dma.done.wait [#allocation3], 8192  }
  0x26   :  { %2012 = vsyncadd [#allocation3], 4294959104 }
  0x27   :  { %2013 = dma.done.wait [#allocation6], 4096  }
  0x28   :  { %2014 = vsyncadd [#allocation6], 4294963200  ;;  %v1795_v0 = vld [vmem:[#allocation5 + $0x40] sm:$0xff]   ;;  %v1799_v4 = vld [vmem:[#allocation5 + $0x48] sm:$0xff]   ;;  %s2026_s1 = smov [#allocation7]  }
  0x29   :  { %v1796_v1 = vld [vmem:[#allocation5 + $0xc0] sm:$0xff]   ;;  %1562 = vmatprep.subr.bf16.mxu0 %v1795_v0  ;;  %v1800_v5 = vld [vmem:[#allocation5 + $0xc8] sm:$0xff]   ;;  %v1803_v8 = vld [vmem:[#allocation5 + $0x50] sm:$0xff]   ;;  %s1280_s12 = sshll.u32 %s2026_s1, 4  ;;  %s1281_s12 = int_to_ptr.vmem [resolvable:$true] %s1280_s12 }
  0x2a   :  { %v1797_v2 = vld [vmem:[#allocation5] sm:$0xff]   ;;  %1674 = vmatprep.subr.bf16.mxu1 %v1796_v1  ;;  %v1801_v6 = vld [vmem:[#allocation5 + $0x8] sm:$0xff]   ;;  %v1804_v9 = vld [vmem:[#allocation5 + $0xd0] sm:$0xff]   ;;  %s1967_s13 = scalar_lea.vmem %s1281_s12, 2048  ;;  %p1972_p3 = scmp.lt.s32.totalorder %s1281_s12, %s1281_s12 }
  0x2b   :  { %v1798_v3 = vld [vmem:[#allocation5 + $0x80] sm:$0xff]   ;;  %1563 = vmatpush3.bf16.msra.mxu0 %v1797_v2  ;;  %v1802_v7 = vld [vmem:[#allocation5 + $0x88] sm:$0xff]   ;;  %v1805_v10 = vld [vmem:[#allocation5 + $0x10] sm:$0xff]   ;;  %p1968_p2 = scmp.ne.s32.totalorder %s1281_s12, %s1967_s13  ;;  %p1973_p4 = scmp.lt.s32.totalorder %s1967_s13, %s1967_s13 }
  0x2c   :  { %1675 = vmatpush3.bf16.msra.mxu1 %v1798_v3  ;;  %1564 = vmatprep.subr.bf16.mxu0 %v1799_v4  ;;  %v1806_v11 = vld [vmem:[#allocation5 + $0x90] sm:$0xff]   ;;  %v1807_v12 = vld [vmem:[#allocation5 + $0x58] sm:$0xff]   ;;  %v1811_v16 = vld [vmem:[#allocation5 + $0x60] sm:$0xff]  }
  0x2d   :  { %1676 = vmatprep.subr.bf16.mxu1 %v1800_v5  ;;  %v1808_v13 = vld [vmem:[#allocation5 + $0xd8] sm:$0xff]   ;;  %v1812_v17 = vld [vmem:[#allocation5 + $0xe0] sm:$0xff]   ;;  %v1815_v20 = vld [vmem:[#allocation5 + $0x68] sm:$0xff]   ;;  %p1974_p5 = por %p1973_p4, %p1972_p3 }
  0x2e   :  { %v1809_v14 = vld [vmem:[#allocation5 + $0x18] sm:$0xff]   ;;  %v1813_v18 = vld [vmem:[#allocation5 + $0x20] sm:$0xff]   ;;  %v1816_v21 = vld [vmem:[#allocation5 + $0xe8] sm:$0xff]  }
  0x2f   :  { %1565 = vmatpush3.bf16.msra.mxu0 %v1801_v6  ;;  %v1810_v15 = vld [vmem:[#allocation5 + $0x98] sm:$0xff]   ;;  %v1814_v19 = vld [vmem:[#allocation5 + $0xa0] sm:$0xff]   ;;  %v1817_v22 = vld [vmem:[#allocation5 + $0x28] sm:$0xff]   ;;  %p1975_p6 = pnand %p1974_p5, %p1968_p2 }
  0x30   :  { %1677 = vmatpush3.bf16.msra.mxu1 %v1802_v7  ;;  %1566 = vmatprep.subr.bf16.mxu0 %v1803_v8  ;;  %v1818_v23 = vld [vmem:[#allocation5 + $0xa8] sm:$0xff]   ;;  %v1819_v24 = vld [vmem:[#allocation5 + $0x70] sm:$0xff]   ;;  %v1823_v28 = vld [vmem:[#allocation5 + $0x78] sm:$0xff]  }
  0x31   :  { %1678 = vmatprep.subr.bf16.mxu1 %v1804_v9  ;;  %v1820_v25 = vld [vmem:[#allocation5 + $0xf0] sm:$0xff]   ;;  %v1824_v29 = vld [vmem:[#allocation5 + $0xf8] sm:$0xff]  }
  0x32   :  { %v1821_v26 = vld [vmem:[#allocation5 + $0x30] sm:$0xff]   ;;  %v1825_v30 = vld [vmem:[#allocation5 + $0x38] sm:$0xff]  }
  0x33   :  { %1567 = vmatpush3.bf16.msra.mxu0 %v1805_v10  ;;  %v1822_v27 = vld [vmem:[#allocation5 + $0xb0] sm:$0xff]   ;;  %v1826_v31 = vld [vmem:[#allocation5 + $0xb8] sm:$0xff]  }
  0x34   :  { %1679 = vmatpush3.bf16.msra.mxu1 %v1806_v11  ;;  %1568 = vmatprep.subr.bf16.mxu0 %v1807_v12  ;;  %v1827_v32 = vld [vmem:[#allocation2] ss:$16 sps:$4 sm:$0xff]   ;;  %v1829_v33 = vld [vmem:[#allocation2 + $0x4] ss:$16 sps:$4 sm:$0xff]   ;;  %v1830_v34 = vld [vmem:[#allocation2 + $0x8] ss:$16 sps:$4 sm:$0xff]  }
  0x35   :  { %1680 = vmatprep.subr.bf16.mxu1 %v1808_v13  ;;  %v1832_v35 = vld [vmem:[#allocation2 + $0xc] ss:$16 sps:$4 sm:$0xff]   ;;  %716 = vmatprep.mubr.bf16.mxu0 %v1829_v33  ;;  %v1833_v36 = vld [vmem:[#allocation2 + $0x24] ss:$16 sps:$4 sm:$0xff]   ;;  %v1837_v38 = vld [vmem:[#allocation2 + $0x20] ss:$16 sps:$4 sm:$0xff]  }
  0x36   :  { %877 = vmatprep.mubr.bf16.mxu1 %v1832_v35  ;;  %v1835_v37 = vld [vmem:[#allocation2 + $0x2c] ss:$16 sps:$4 sm:$0xff]   ;;  %v1838_v39 = vld [vmem:[#allocation2 + $0x28] ss:$16 sps:$4 sm:$0xff]   ;;  %v1839_v40 = vld [vmem:[#allocation2 + $0x44] ss:$16 sps:$4 sm:$0xff]  }
  0x37   :  { %1569 = vmatpush3.bf16.msra.mxu0 %v1809_v14  ;;  %v1841_v41 = vld [vmem:[#allocation2 + $0x4c] ss:$16 sps:$4 sm:$0xff]   ;;  %v1843_v42 = vld [vmem:[#allocation2 + $0x40] ss:$16 sps:$4 sm:$0xff]   ;;  %v1844_v43 = vld [vmem:[#allocation2 + $0x48] ss:$16 sps:$4 sm:$0xff]  }
  0x38   :  { %1681 = vmatpush3.bf16.msra.mxu1 %v1810_v15  ;;  %1570 = vmatprep.subr.bf16.mxu0 %v1811_v16  ;;  %v1845_v44 = vld [vmem:[#allocation2 + $0x64] ss:$16 sps:$4 sm:$0xff]   ;;  %v1847_v45 = vld [vmem:[#allocation2 + $0x6c] ss:$16 sps:$4 sm:$0xff]   ;;  %v1849_v46 = vld [vmem:[#allocation2 + $0x60] ss:$16 sps:$4 sm:$0xff]  }
  0x39   :  { %1682 = vmatprep.subr.bf16.mxu1 %v1812_v17  ;;  %v1850_v47 = vld [vmem:[#allocation2 + $0x68] ss:$16 sps:$4 sm:$0xff]   ;;  %v1851_v48 = vld [vmem:[#allocation2 + $0x84] ss:$16 sps:$4 sm:$0xff]   ;;  %v1853_v49 = vld [vmem:[#allocation2 + $0x8c] ss:$16 sps:$4 sm:$0xff]  }
  0x3a   :  { %v1855_v50 = vld [vmem:[#allocation2 + $0x80] ss:$16 sps:$4 sm:$0xff]   ;;  %v1856_v51 = vld [vmem:[#allocation2 + $0x88] ss:$16 sps:$4 sm:$0xff]   ;;  %v1857_v52 = vld [vmem:[#allocation2 + $0xa4] ss:$16 sps:$4 sm:$0xff]  }
  0x3b   :  { %1571 = vmatpush3.bf16.msra.mxu0 %v1813_v18  ;;  %v1859_v53 = vld [vmem:[#allocation2 + $0xac] ss:$16 sps:$4 sm:$0xff]   ;;  %v1861_v54 = vld [vmem:[#allocation2 + $0xa0] ss:$16 sps:$4 sm:$0xff]   ;;  %v1862_v55 = vld [vmem:[#allocation2 + $0xa8] ss:$16 sps:$4 sm:$0xff]  }
  0x3c   :  { %1683 = vmatpush3.bf16.msra.mxu1 %v1814_v19  ;;  %1572 = vmatprep.subr.bf16.mxu0 %v1815_v20  ;;  %v1863_v56 = vld [vmem:[#allocation2 + $0xc4] ss:$16 sps:$4 sm:$0xff]   ;;  %v1865_v57 = vld [vmem:[#allocation2 + $0xcc] ss:$16 sps:$4 sm:$0xff]   ;;  %v1867_v58 = vld [vmem:[#allocation2 + $0xc0] ss:$16 sps:$4 sm:$0xff]  }
  0x3d   :  { %1684 = vmatprep.subr.bf16.mxu1 %v1816_v21  ;;  %v1868_v59 = vld [vmem:[#allocation2 + $0xc8] ss:$16 sps:$4 sm:$0xff]   ;;  %v1869_v60 = vld [vmem:[#allocation2 + $0xe4] ss:$16 sps:$4 sm:$0xff]   ;;  %v1871_v61 = vld [vmem:[#allocation2 + $0xec] ss:$16 sps:$4 sm:$0xff]  }
  0x3e   :  { %v1873_v62 = vld [vmem:[#allocation2 + $0xe0] ss:$16 sps:$4 sm:$0xff]   ;;  %v1874_v63 = vld [vmem:[#allocation2 + $0xe8] ss:$16 sps:$4 sm:$0xff]   ;;  %v1875_v0 = vld [vmem:[#allocation2 + $0x104] ss:$16 sps:$4 sm:$0xff]  }
  0x3f   :  { %1573 = vmatpush3.bf16.msra.mxu0 %v1817_v22  ;;  %v1877_v1 = vld [vmem:[#allocation2 + $0x10c] ss:$16 sps:$4 sm:$0xff]   ;;  %v1879_v2 = vld [vmem:[#allocation2 + $0x100] ss:$16 sps:$4 sm:$0xff]   ;;  %v1880_v3 = vld [vmem:[#allocation2 + $0x108] ss:$16 sps:$4 sm:$0xff]  }
  0x40   :  { %1685 = vmatpush3.bf16.msra.mxu1 %v1818_v23  ;;  %1574 = vmatprep.subr.bf16.mxu0 %v1819_v24  ;;  %v1881_v4 = vld [vmem:[#allocation2 + $0x124] ss:$16 sps:$4 sm:$0xff]   ;;  %v1883_v5 = vld [vmem:[#allocation2 + $0x12c] ss:$16 sps:$4 sm:$0xff]   ;;  %v1885_v6 = vld [vmem:[#allocation2 + $0x120] ss:$16 sps:$4 sm:$0xff]  }
  0x41   :  { %1686 = vmatprep.subr.bf16.mxu1 %v1820_v25  ;;  %v1886_v7 = vld [vmem:[#allocation2 + $0x128] ss:$16 sps:$4 sm:$0xff]   ;;  %v1887_v8 = vld [vmem:[#allocation2 + $0x144] ss:$16 sps:$4 sm:$0xff]   ;;  %v1889_v9 = vld [vmem:[#allocation2 + $0x14c] ss:$16 sps:$4 sm:$0xff]  }
  0x42   :  { %v1891_v10 = vld [vmem:[#allocation2 + $0x140] ss:$16 sps:$4 sm:$0xff]   ;;  %v1892_v11 = vld [vmem:[#allocation2 + $0x148] ss:$16 sps:$4 sm:$0xff]   ;;  %v1893_v12 = vld [vmem:[#allocation2 + $0x164] ss:$16 sps:$4 sm:$0xff]  }
  0x43   :  { %1575 = vmatpush3.bf16.msra.mxu0 %v1821_v26  ;;  %v1895_v13 = vld [vmem:[#allocation2 + $0x16c] ss:$16 sps:$4 sm:$0xff]   ;;  %v1897_v14 = vld [vmem:[#allocation2 + $0x160] ss:$16 sps:$4 sm:$0xff]   ;;  %v1898_v15 = vld [vmem:[#allocation2 + $0x168] ss:$16 sps:$4 sm:$0xff]  }
  0x44   :  { %1687 = vmatpush3.bf16.msra.mxu1 %v1822_v27  ;;  %1576 = vmatprep.subr.bf16.mxu0 %v1823_v28  ;;  %v1899_v16 = vld [vmem:[#allocation2 + $0x184] ss:$16 sps:$4 sm:$0xff]   ;;  %v1901_v17 = vld [vmem:[#allocation2 + $0x18c] ss:$16 sps:$4 sm:$0xff]   ;;  %v1903_v18 = vld [vmem:[#allocation2 + $0x180] ss:$16 sps:$4 sm:$0xff]  }
  0x45   :  { %1688 = vmatprep.subr.bf16.mxu1 %v1824_v29  ;;  %v1904_v19 = vld [vmem:[#allocation2 + $0x188] ss:$16 sps:$4 sm:$0xff]   ;;  %v1905_v20 = vld [vmem:[#allocation2 + $0x1a4] ss:$16 sps:$4 sm:$0xff]   ;;  %v1907_v21 = vld [vmem:[#allocation2 + $0x1ac] ss:$16 sps:$4 sm:$0xff]  }
  0x46   :  { %v1909_v22 = vld [vmem:[#allocation2 + $0x1a0] ss:$16 sps:$4 sm:$0xff]   ;;  %v1910_v23 = vld [vmem:[#allocation2 + $0x1a8] ss:$16 sps:$4 sm:$0xff]   ;;  %v1911_v24 = vld [vmem:[#allocation2 + $0x1c4] ss:$16 sps:$4 sm:$0xff]  }
  0x47   :  { %1577 = vmatpush3.bf16.msra.mxu0 %v1825_v30  ;;  %v1913_v25 = vld [vmem:[#allocation2 + $0x1cc] ss:$16 sps:$4 sm:$0xff]   ;;  %v1915_v26 = vld [vmem:[#allocation2 + $0x1c0] ss:$16 sps:$4 sm:$0xff]   ;;  %v1916_v27 = vld [vmem:[#allocation2 + $0x1c8] ss:$16 sps:$4 sm:$0xff]  }
  0x48   :  { %1689 = vmatpush3.bf16.msra.mxu1 %v1826_v31  ;;  %v1917_v28 = vld [vmem:[#allocation2 + $0x1e4] ss:$16 sps:$4 sm:$0xff]   ;;  %v1919_v29 = vld [vmem:[#allocation2 + $0x1ec] ss:$16 sps:$4 sm:$0xff]   ;;  %v1921_v30 = vld [vmem:[#allocation2 + $0x1e0] ss:$16 sps:$4 sm:$0xff]  }
  0x49   :  { %v1922_v31 = vld [vmem:[#allocation2 + $0x1e8] ss:$16 sps:$4 sm:$0xff]  }
  0x4a   :  { %717 = vmatmul.mubr.bf16.vlgmr.msra.gmra.mrb[0].mxu0 %v1827_v32 }
  0x4b   :  { %878 = vmatmul.mubr.bf16.vlgmr.msra.gmra.mrb[0].mxu1 %v1830_v34  ;;  %724 = vmatprep.mubr.bf16.mxu0 %v1833_v36 }
  0x4c   :  { %885 = vmatprep.mubr.bf16.mxu1 %v1835_v37 }
  0x52   :  { %725 = vmatmul.mubr.bf16.gmra.mrb[4].mxu0 %v1837_v38 }
  0x53   :  { %886 = vmatmul.mubr.bf16.gmra.mrb[4].mxu1 %v1838_v39  ;;  %732 = vmatprep.mubr.bf16.mxu0 %v1839_v40 }
  0x54   :  { %893 = vmatprep.mubr.bf16.mxu1 %v1841_v41 }
  0x5a   :  { %733 = vmatmul.mubr.bf16.gmra.mrb[8].mxu0 %v1843_v42 }
  0x5b   :  { %894 = vmatmul.mubr.bf16.gmra.mrb[8].mxu1 %v1844_v43  ;;  %740 = vmatprep.mubr.bf16.mxu0 %v1845_v44 }
  0x5c   :  { %901 = vmatprep.mubr.bf16.mxu1 %v1847_v45 }
  0x62   :  { %741 = vmatmul.mubr.bf16.gmra.mrb[12].mxu0 %v1849_v46 }
  0x63   :  { %902 = vmatmul.mubr.bf16.gmra.mrb[12].mxu1 %v1850_v47  ;;  %748 = vmatprep.mubr.bf16.mxu0 %v1851_v48 }
  0x64   :  { %909 = vmatprep.mubr.bf16.mxu1 %v1853_v49 }
  0x6a   :  { %749 = vmatmul.mubr.bf16.gmra.mrb[16].mxu0 %v1855_v50 }
  0x6b   :  { %910 = vmatmul.mubr.bf16.gmra.mrb[16].mxu1 %v1856_v51  ;;  %756 = vmatprep.mubr.bf16.mxu0 %v1857_v52 }
  0x6c   :  { %917 = vmatprep.mubr.bf16.mxu1 %v1859_v53 }
  0x72   :  { %757 = vmatmul.mubr.bf16.gmra.mrb[20].mxu0 %v1861_v54 }
  0x73   :  { %918 = vmatmul.mubr.bf16.gmra.mrb[20].mxu1 %v1862_v55  ;;  %764 = vmatprep.mubr.bf16.mxu0 %v1863_v56 }
  0x74   :  { %925 = vmatprep.mubr.bf16.mxu1 %v1865_v57 }
  0x7a   :  { %765 = vmatmul.mubr.bf16.gmra.mrb[24].mxu0 %v1867_v58 }
  0x7b   :  { %926 = vmatmul.mubr.bf16.gmra.mrb[24].mxu1 %v1868_v59  ;;  %772 = vmatprep.mubr.bf16.mxu0 %v1869_v60 }
  0x7c   :  { %933 = vmatprep.mubr.bf16.mxu1 %v1871_v61 }
  0x82   :  { %773 = vmatmul.mubr.bf16.gmra.mrb[28].mxu0 %v1873_v62 }
  0x83   :  { %934 = vmatmul.mubr.bf16.gmra.mrb[28].mxu1 %v1874_v63  ;;  %780 = vmatprep.mubr.bf16.mxu0 %v1875_v0 }
  0x84   :  { %941 = vmatprep.mubr.bf16.mxu1 %v1877_v1 }
  0x8a   :  { %781 = vmatmul.mubr.bf16.gmra.mrb[32].mxu0 %v1879_v2 }
  0x8b   :  { %942 = vmatmul.mubr.bf16.gmra.mrb[32].mxu1 %v1880_v3  ;;  %788 = vmatprep.mubr.bf16.mxu0 %v1881_v4 }
  0x8c   :  { %949 = vmatprep.mubr.bf16.mxu1 %v1883_v5 }
  0x92   :  { %789 = vmatmul.mubr.bf16.gmra.mrb[36].mxu0 %v1885_v6 }
  0x93   :  { %950 = vmatmul.mubr.bf16.gmra.mrb[36].mxu1 %v1886_v7  ;;  %796 = vmatprep.mubr.bf16.mxu0 %v1887_v8 }
  0x94   :  { %957 = vmatprep.mubr.bf16.mxu1 %v1889_v9 }
  0x9a   :  { %797 = vmatmul.mubr.bf16.gmra.mrb[40].mxu0 %v1891_v10  ;;  %v2025_v10 = vmov 0.0  }
  0x9b   :  { %958 = vmatmul.mubr.bf16.gmra.mrb[40].mxu1 %v1892_v11  ;;  %804 = vmatprep.mubr.bf16.mxu0 %v1893_v12  ;;  %1274 = vst [vmem:[#allocation8 + $0x2] sm:$0x3f] %v2025_v10 }
  0x9c   :  { %965 = vmatprep.mubr.bf16.mxu1 %v1895_v13 }
  0xa2   :  { %805 = vmatmul.mubr.bf16.gmra.mrb[44].mxu0 %v1897_v14 }
  0xa3   :  { %966 = vmatmul.mubr.bf16.gmra.mrb[44].mxu1 %v1898_v15  ;;  %812 = vmatprep.mubr.bf16.mxu0 %v1899_v16 }
  0xa4   :  { %973 = vmatprep.mubr.bf16.mxu1 %v1901_v17 }
  0xaa   :  { %813 = vmatmul.mubr.bf16.gmra.mrb[48].mxu0 %v1903_v18 }
  0xab   :  { %974 = vmatmul.mubr.bf16.gmra.mrb[48].mxu1 %v1904_v19  ;;  %820 = vmatprep.mubr.bf16.mxu0 %v1905_v20 }
  0xac   :  { %981 = vmatprep.mubr.bf16.mxu1 %v1907_v21 }
  0xb2   :  { %821 = vmatmul.mubr.bf16.gmra.mrb[52].mxu0 %v1909_v22 }
  0xb3   :  { %982 = vmatmul.mubr.bf16.gmra.mrb[52].mxu1 %v1910_v23  ;;  %828 = vmatprep.mubr.bf16.mxu0 %v1911_v24 }
  0xb4   :  { %989 = vmatprep.mubr.bf16.mxu1 %v1913_v25 }
  0xba   :  { %829 = vmatmul.mubr.bf16.gmra.mrb[56].mxu0 %v1915_v26 }
  0xbb   :  { %990 = vmatmul.mubr.bf16.gmra.mrb[56].mxu1 %v1916_v27  ;;  %836 = vmatprep.mubr.bf16.mxu0 %v1917_v28 }
  0xbc   :  { %997 = vmatprep.mubr.bf16.mxu1 %v1919_v29 }
  0xc2   :  { %837 = vmatmul.mubr.bf16.gmra.mrb[60].mxu0 %v1921_v30 }
  0xc3   :  { %998 = vmatmul.mubr.bf16.gmra.mrb[60].mxu1 %v1922_v31 }
 0x11d   :  { %v1578_v32 = vpop.f32.mrb[0].mxu0 }
 0x11e   :  { %v1690_v33 = vpop.f32.mrb[0].mxu1  ;;  %v1579_v34 = vpop.f32.mrb[1].mxu0 }
 0x11f   :  { %v1580_v35 = vadd.f32 %v1579_v34, %v1578_v32  ;;  %v1691_v36 = vpop.f32.mrb[1].mxu1  ;;  %v1581_v37 = vpop.f32.mrb[2].mxu0 }
 0x120   :  { %v1692_v38 = vadd.f32 %v1691_v36, %v1690_v33  ;;  %v1693_v39 = vpop.f32.mrb[2].mxu1  ;;  %v1582_v40 = vpop.f32.mrb[3].mxu0 }
 0x121   :  { %v1583_v41 = vadd.f32 %v1582_v40, %v1581_v37  ;;  %v1694_v42 = vpop.f32.mrb[3].mxu1 }
 0x122   :  { %v880_v43 = vadd.f32 %v1692_v38, %v1580_v35  ;;  %v1695_v44 = vadd.f32 %v1694_v42, %v1693_v39 }
 0x124   :  { %v883_v45 = vadd.f32 %v1695_v44, %v1583_v41  ;;  %v1204_v47 = vmul.f32 %v880_v43, %v880_v43 }
 0x125   :  { %v1584_v46 = vpop.f32.mrb[4].mxu0 }
 0x126   :  { %v1470_v48 = vpack.c.bf16 %v883_v45, %v880_v43  ;;  %v1166_v49 = vadd.f32 %v883_v45, %v880_v43  ;;  %v1205_v50 = vmul.f32 %v883_v45, %v883_v45  ;;  %v1696_v51 = vpop.f32.mrb[4].mxu1  ;;  %v1585_v52 = vpop.f32.mrb[5].mxu0 }
 0x127   :  { %v1586_v53 = vadd.f32 %v1585_v52, %v1584_v46  ;;  %v1697_v54 = vpop.f32.mrb[5].mxu1  ;;  %v1587_v55 = vpop.f32.mrb[6].mxu0 }
 0x128   :  { %1471 = vst [vmem:[#allocation7] sm:$0xff] %v1470_v48   ;;  %v1236_v56 = vadd.f32 %v1205_v50, %v1204_v47  ;;  %v1698_v57 = vadd.f32 %v1697_v54, %v1696_v51  ;;  %v1699_v58 = vpop.f32.mrb[6].mxu1  ;;  %v1588_v59 = vpop.f32.mrb[7].mxu0 }
 0x129   :  { %v1589_v60 = vadd.f32 %v1588_v59, %v1587_v55  ;;  %v1700_v61 = vpop.f32.mrb[7].mxu1 }
 0x12a   :  { %v888_v62 = vadd.f32 %v1698_v57, %v1586_v53  ;;  %v1701_v63 = vadd.f32 %v1700_v61, %v1699_v58 }
 0x12c   :  { %v1167_v0 = vadd.f32 %v1166_v49, %v888_v62  ;;  %v1206_v1 = vmul.f32 %v888_v62, %v888_v62  ;;  %v891_v2 = vadd.f32 %v1701_v63, %v1589_v60 }
 0x12d   :  { %v1590_v3 = vpop.f32.mrb[8].mxu0 }
 0x12e   :  { %v1237_v4 = vadd.f32 %v1236_v56, %v1206_v1  ;;  %v1475_v5 = vpack.c.bf16 %v891_v2, %v888_v62  ;;  %v1168_v6 = vadd.f32 %v1167_v0, %v891_v2  ;;  %v1207_v7 = vmul.f32 %v891_v2, %v891_v2  ;;  %v1702_v8 = vpop.f32.mrb[8].mxu1  ;;  %v1591_v9 = vpop.f32.mrb[9].mxu0 }
 0x12f   :  { %v1592_v11 = vadd.f32 %v1591_v9, %v1590_v3  ;;  %v1703_v12 = vpop.f32.mrb[9].mxu1  ;;  %v1593_v13 = vpop.f32.mrb[10].mxu0 }
 0x130   :  { %1547 = vst [vmem:[#allocation7 + $0x8] sm:$0xff] %v1475_v5   ;;  %v1238_v14 = vadd.f32 %v1237_v4, %v1207_v7  ;;  %v1704_v15 = vadd.f32 %v1703_v12, %v1702_v8  ;;  %v1705_v16 = vpop.f32.mrb[10].mxu1  ;;  %v1594_v17 = vpop.f32.mrb[11].mxu0 }
 0x131   :  { %v1595_v18 = vadd.f32 %v1594_v17, %v1593_v13  ;;  %v1706_v19 = vpop.f32.mrb[11].mxu1 }
 0x132   :  { %v896_v20 = vadd.f32 %v1704_v15, %v1592_v11  ;;  %v1707_v21 = vadd.f32 %v1706_v19, %v1705_v16 }
 0x134   :  { %v1169_v22 = vadd.f32 %v1168_v6, %v896_v20  ;;  %v1208_v23 = vmul.f32 %v896_v20, %v896_v20  ;;  %v899_v24 = vadd.f32 %v1707_v21, %v1595_v18 }
 0x135   :  { %v1596_v25 = vpop.f32.mrb[12].mxu0 }
 0x136   :  { %v1239_v26 = vadd.f32 %v1238_v14, %v1208_v23  ;;  %v1480_v27 = vpack.c.bf16 %v899_v24, %v896_v20  ;;  %v1170_v28 = vadd.f32 %v1169_v22, %v899_v24  ;;  %v1209_v29 = vmul.f32 %v899_v24, %v899_v24  ;;  %v1708_v30 = vpop.f32.mrb[12].mxu1  ;;  %v1597_v31 = vpop.f32.mrb[13].mxu0 }
 0x137   :  { %v1598_v32 = vadd.f32 %v1597_v31, %v1596_v25  ;;  %v1709_v33 = vpop.f32.mrb[13].mxu1  ;;  %v1599_v34 = vpop.f32.mrb[14].mxu0 }
 0x138   :  { %1548 = vst [vmem:[#allocation7 + $0x10] sm:$0xff] %v1480_v27   ;;  %v1240_v35 = vadd.f32 %v1239_v26, %v1209_v29  ;;  %v1710_v36 = vadd.f32 %v1709_v33, %v1708_v30  ;;  %v1711_v37 = vpop.f32.mrb[14].mxu1  ;;  %v1600_v38 = vpop.f32.mrb[15].mxu0 }
 0x139   :  { %v1601_v39 = vadd.f32 %v1600_v38, %v1599_v34  ;;  %v1712_v40 = vpop.f32.mrb[15].mxu1 }
 0x13a   :  { %v904_v41 = vadd.f32 %v1710_v36, %v1598_v32  ;;  %v1713_v42 = vadd.f32 %v1712_v40, %v1711_v37 }
 0x13c   :  { %v1171_v43 = vadd.f32 %v1170_v28, %v904_v41  ;;  %v1210_v44 = vmul.f32 %v904_v41, %v904_v41  ;;  %v907_v45 = vadd.f32 %v1713_v42, %v1601_v39 }
 0x13d   :  { %v1602_v46 = vpop.f32.mrb[16].mxu0 }
 0x13e   :  { %v1241_v47 = vadd.f32 %v1240_v35, %v1210_v44  ;;  %v1485_v48 = vpack.c.bf16 %v907_v45, %v904_v41  ;;  %v1172_v49 = vadd.f32 %v1171_v43, %v907_v45  ;;  %v1211_v50 = vmul.f32 %v907_v45, %v907_v45  ;;  %v1714_v51 = vpop.f32.mrb[16].mxu1  ;;  %v1603_v52 = vpop.f32.mrb[17].mxu0 }
 0x13f   :  { %v1604_v53 = vadd.f32 %v1603_v52, %v1602_v46  ;;  %v1715_v54 = vpop.f32.mrb[17].mxu1  ;;  %v1605_v55 = vpop.f32.mrb[18].mxu0 }
 0x140   :  { %1549 = vst [vmem:[#allocation7 + $0x18] sm:$0xff] %v1485_v48   ;;  %v1242_v56 = vadd.f32 %v1241_v47, %v1211_v50  ;;  %v1716_v57 = vadd.f32 %v1715_v54, %v1714_v51  ;;  %v1717_v58 = vpop.f32.mrb[18].mxu1  ;;  %v1606_v59 = vpop.f32.mrb[19].mxu0 }
 0x141   :  { %v1607_v60 = vadd.f32 %v1606_v59, %v1605_v55  ;;  %v1718_v61 = vpop.f32.mrb[19].mxu1 }
 0x142   :  { %v912_v62 = vadd.f32 %v1716_v57, %v1604_v53  ;;  %v1719_v63 = vadd.f32 %v1718_v61, %v1717_v58 }
 0x144   :  { %v1173_v0 = vadd.f32 %v1172_v49, %v912_v62  ;;  %v1212_v1 = vmul.f32 %v912_v62, %v912_v62  ;;  %v915_v2 = vadd.f32 %v1719_v63, %v1607_v60 }
 0x145   :  { %v1608_v3 = vpop.f32.mrb[20].mxu0 }
 0x146   :  { %v1243_v4 = vadd.f32 %v1242_v56, %v1212_v1  ;;  %v1490_v5 = vpack.c.bf16 %v915_v2, %v912_v62  ;;  %v1174_v6 = vadd.f32 %v1173_v0, %v915_v2  ;;  %v1213_v7 = vmul.f32 %v915_v2, %v915_v2  ;;  %v1720_v8 = vpop.f32.mrb[20].mxu1  ;;  %v1609_v9 = vpop.f32.mrb[21].mxu0 }
 0x147   :  { %v1610_v10 = vadd.f32 %v1609_v9, %v1608_v3  ;;  %v1721_v11 = vpop.f32.mrb[21].mxu1  ;;  %v1611_v12 = vpop.f32.mrb[22].mxu0 }
 0x148   :  { %1550 = vst [vmem:[#allocation7 + $0x20] sm:$0xff] %v1490_v5   ;;  %v1244_v13 = vadd.f32 %v1243_v4, %v1213_v7  ;;  %v1722_v14 = vadd.f32 %v1721_v11, %v1720_v8  ;;  %v1723_v15 = vpop.f32.mrb[22].mxu1  ;;  %v1612_v16 = vpop.f32.mrb[23].mxu0 }
 0x149   :  { %v1613_v17 = vadd.f32 %v1612_v16, %v1611_v12  ;;  %v1724_v18 = vpop.f32.mrb[23].mxu1 }
 0x14a   :  { %v920_v19 = vadd.f32 %v1722_v14, %v1610_v10  ;;  %v1725_v20 = vadd.f32 %v1724_v18, %v1723_v15 }
 0x14c   :  { %v1175_v21 = vadd.f32 %v1174_v6, %v920_v19  ;;  %v1214_v22 = vmul.f32 %v920_v19, %v920_v19  ;;  %v923_v23 = vadd.f32 %v1725_v20, %v1613_v17 }
 0x14d   :  { %v1614_v24 = vpop.f32.mrb[24].mxu0 }
 0x14e   :  { %v1245_v25 = vadd.f32 %v1244_v13, %v1214_v22  ;;  %v1495_v26 = vpack.c.bf16 %v923_v23, %v920_v19  ;;  %v1176_v27 = vadd.f32 %v1175_v21, %v923_v23  ;;  %v1215_v28 = vmul.f32 %v923_v23, %v923_v23  ;;  %v1726_v29 = vpop.f32.mrb[24].mxu1  ;;  %v1615_v30 = vpop.f32.mrb[25].mxu0 }
 0x14f   :  { %v1616_v31 = vadd.f32 %v1615_v30, %v1614_v24  ;;  %v1727_v32 = vpop.f32.mrb[25].mxu1  ;;  %v1617_v33 = vpop.f32.mrb[26].mxu0 }
 0x150   :  { %1551 = vst [vmem:[#allocation7 + $0x28] sm:$0xff] %v1495_v26   ;;  %v1246_v34 = vadd.f32 %v1245_v25, %v1215_v28  ;;  %v1728_v35 = vadd.f32 %v1727_v32, %v1726_v29  ;;  %v1729_v36 = vpop.f32.mrb[26].mxu1  ;;  %v1618_v37 = vpop.f32.mrb[27].mxu0 }
 0x151   :  { %v1619_v38 = vadd.f32 %v1618_v37, %v1617_v33  ;;  %v1730_v39 = vpop.f32.mrb[27].mxu1 }
 0x152   :  { %v928_v40 = vadd.f32 %v1728_v35, %v1616_v31  ;;  %v1731_v41 = vadd.f32 %v1730_v39, %v1729_v36 }
 0x154   :  { %v1177_v42 = vadd.f32 %v1176_v27, %v928_v40  ;;  %v1216_v43 = vmul.f32 %v928_v40, %v928_v40  ;;  %v931_v44 = vadd.f32 %v1731_v41, %v1619_v38 }
 0x155   :  { %v1620_v45 = vpop.f32.mrb[28].mxu0 }
 0x156   :  { %v1247_v46 = vadd.f32 %v1246_v34, %v1216_v43  ;;  %v1500_v47 = vpack.c.bf16 %v931_v44, %v928_v40  ;;  %v1178_v48 = vadd.f32 %v1177_v42, %v931_v44  ;;  %v1217_v49 = vmul.f32 %v931_v44, %v931_v44  ;;  %v1732_v50 = vpop.f32.mrb[28].mxu1  ;;  %v1621_v51 = vpop.f32.mrb[29].mxu0 }
 0x157   :  { %v1622_v52 = vadd.f32 %v1621_v51, %v1620_v45  ;;  %v1733_v53 = vpop.f32.mrb[29].mxu1  ;;  %v1623_v54 = vpop.f32.mrb[30].mxu0 }
 0x158   :  { %1552 = vst [vmem:[#allocation7 + $0x30] sm:$0xff] %v1500_v47   ;;  %v1248_v55 = vadd.f32 %v1247_v46, %v1217_v49  ;;  %v1734_v56 = vadd.f32 %v1733_v53, %v1732_v50  ;;  %v1735_v57 = vpop.f32.mrb[30].mxu1  ;;  %v1624_v58 = vpop.f32.mrb[31].mxu0 }
 0x159   :  { %v1625_v59 = vadd.f32 %v1624_v58, %v1623_v54  ;;  %v1736_v60 = vpop.f32.mrb[31].mxu1 }
 0x15a   :  { %v936_v61 = vadd.f32 %v1734_v56, %v1622_v52  ;;  %v1737_v62 = vadd.f32 %v1736_v60, %v1735_v57 }
 0x15c   :  { %v1179_v63 = vadd.f32 %v1178_v48, %v936_v61  ;;  %v1218_v0 = vmul.f32 %v936_v61, %v936_v61  ;;  %v939_v1 = vadd.f32 %v1737_v62, %v1625_v59 }
 0x15d   :  { %v1626_v2 = vpop.f32.mrb[32].mxu0 }
 0x15e   :  { %v1249_v3 = vadd.f32 %v1248_v55, %v1218_v0  ;;  %v1505_v4 = vpack.c.bf16 %v939_v1, %v936_v61  ;;  %v1180_v5 = vadd.f32 %v1179_v63, %v939_v1  ;;  %v1219_v6 = vmul.f32 %v939_v1, %v939_v1  ;;  %v1738_v7 = vpop.f32.mrb[32].mxu1  ;;  %v1627_v8 = vpop.f32.mrb[33].mxu0 }
 0x15f   :  { %v1628_v9 = vadd.f32 %v1627_v8, %v1626_v2  ;;  %v1739_v10 = vpop.f32.mrb[33].mxu1  ;;  %v1629_v11 = vpop.f32.mrb[34].mxu0 }
 0x160   :  { %1553 = vst [vmem:[#allocation7 + $0x38] sm:$0xff] %v1505_v4   ;;  %v1250_v12 = vadd.f32 %v1249_v3, %v1219_v6  ;;  %v1740_v13 = vadd.f32 %v1739_v10, %v1738_v7  ;;  %v1741_v14 = vpop.f32.mrb[34].mxu1  ;;  %v1630_v15 = vpop.f32.mrb[35].mxu0 }
 0x161   :  { %v1631_v16 = vadd.f32 %v1630_v15, %v1629_v11  ;;  %v1742_v17 = vpop.f32.mrb[35].mxu1 }
 0x162   :  { %v944_v18 = vadd.f32 %v1740_v13, %v1628_v9  ;;  %v1743_v19 = vadd.f32 %v1742_v17, %v1741_v14 }
 0x164   :  { %v1181_v20 = vadd.f32 %v1180_v5, %v944_v18  ;;  %v1220_v21 = vmul.f32 %v944_v18, %v944_v18  ;;  %v947_v22 = vadd.f32 %v1743_v19, %v1631_v16 }
 0x165   :  { %v1632_v23 = vpop.f32.mrb[36].mxu0 }
 0x166   :  { %v1251_v24 = vadd.f32 %v1250_v12, %v1220_v21  ;;  %v1510_v25 = vpack.c.bf16 %v947_v22, %v944_v18  ;;  %v1182_v26 = vadd.f32 %v1181_v20, %v947_v22  ;;  %v1221_v27 = vmul.f32 %v947_v22, %v947_v22  ;;  %v1744_v28 = vpop.f32.mrb[36].mxu1  ;;  %v1633_v29 = vpop.f32.mrb[37].mxu0 }
 0x167   :  { %v1634_v30 = vadd.f32 %v1633_v29, %v1632_v23  ;;  %v1745_v31 = vpop.f32.mrb[37].mxu1  ;;  %v1635_v32 = vpop.f32.mrb[38].mxu0 }
 0x168   :  { %1554 = vst [vmem:[#allocation7 + $0x40] sm:$0xff] %v1510_v25   ;;  %v1252_v33 = vadd.f32 %v1251_v24, %v1221_v27  ;;  %v1746_v34 = vadd.f32 %v1745_v31, %v1744_v28  ;;  %v1747_v35 = vpop.f32.mrb[38].mxu1  ;;  %v1636_v36 = vpop.f32.mrb[39].mxu0 }
 0x169   :  { %v1637_v37 = vadd.f32 %v1636_v36, %v1635_v32  ;;  %v1748_v38 = vpop.f32.mrb[39].mxu1 }
 0x16a   :  { %v952_v39 = vadd.f32 %v1746_v34, %v1634_v30  ;;  %v1749_v40 = vadd.f32 %v1748_v38, %v1747_v35 }
 0x16c   :  { %v1183_v41 = vadd.f32 %v1182_v26, %v952_v39  ;;  %v1222_v42 = vmul.f32 %v952_v39, %v952_v39  ;;  %v955_v43 = vadd.f32 %v1749_v40, %v1637_v37 }
 0x16d   :  { %v1638_v44 = vpop.f32.mrb[40].mxu0 }
 0x16e   :  { %v1253_v45 = vadd.f32 %v1252_v33, %v1222_v42  ;;  %v1515_v46 = vpack.c.bf16 %v955_v43, %v952_v39  ;;  %v1184_v47 = vadd.f32 %v1183_v41, %v955_v43  ;;  %v1223_v48 = vmul.f32 %v955_v43, %v955_v43  ;;  %v1750_v49 = vpop.f32.mrb[40].mxu1  ;;  %v1639_v50 = vpop.f32.mrb[41].mxu0 }
 0x16f   :  { %v1640_v51 = vadd.f32 %v1639_v50, %v1638_v44  ;;  %v1751_v52 = vpop.f32.mrb[41].mxu1  ;;  %v1641_v53 = vpop.f32.mrb[42].mxu0 }
 0x170   :  { %1555 = vst [vmem:[#allocation7 + $0x48] sm:$0xff] %v1515_v46   ;;  %v1254_v54 = vadd.f32 %v1253_v45, %v1223_v48  ;;  %v1752_v55 = vadd.f32 %v1751_v52, %v1750_v49  ;;  %v1753_v56 = vpop.f32.mrb[42].mxu1  ;;  %v1642_v57 = vpop.f32.mrb[43].mxu0 }
 0x171   :  { %v1643_v58 = vadd.f32 %v1642_v57, %v1641_v53  ;;  %v1754_v59 = vpop.f32.mrb[43].mxu1 }
 0x172   :  { %v960_v60 = vadd.f32 %v1752_v55, %v1640_v51  ;;  %v1755_v61 = vadd.f32 %v1754_v59, %v1753_v56 }
 0x174   :  { %v1185_v62 = vadd.f32 %v1184_v47, %v960_v60  ;;  %v1224_v63 = vmul.f32 %v960_v60, %v960_v60  ;;  %v963_v0 = vadd.f32 %v1755_v61, %v1643_v58 }
 0x175   :  { %v1644_v1 = vpop.f32.mrb[44].mxu0 }
 0x176   :  { %v1255_v2 = vadd.f32 %v1254_v54, %v1224_v63  ;;  %v1520_v3 = vpack.c.bf16 %v963_v0, %v960_v60  ;;  %v1186_v4 = vadd.f32 %v1185_v62, %v963_v0  ;;  %v1225_v5 = vmul.f32 %v963_v0, %v963_v0  ;;  %v1756_v6 = vpop.f32.mrb[44].mxu1  ;;  %v1645_v7 = vpop.f32.mrb[45].mxu0 }
 0x177   :  { %v1646_v8 = vadd.f32 %v1645_v7, %v1644_v1  ;;  %v1757_v9 = vpop.f32.mrb[45].mxu1  ;;  %v1647_v10 = vpop.f32.mrb[46].mxu0 }
 0x178   :  { %1556 = vst [vmem:[#allocation7 + $0x50] sm:$0xff] %v1520_v3   ;;  %v1256_v11 = vadd.f32 %v1255_v2, %v1225_v5  ;;  %v1758_v12 = vadd.f32 %v1757_v9, %v1756_v6  ;;  %v1759_v13 = vpop.f32.mrb[46].mxu1  ;;  %v1648_v14 = vpop.f32.mrb[47].mxu0 }
 0x179   :  { %v1649_v15 = vadd.f32 %v1648_v14, %v1647_v10  ;;  %v1760_v16 = vpop.f32.mrb[47].mxu1 }
 0x17a   :  { %v968_v17 = vadd.f32 %v1758_v12, %v1646_v8  ;;  %v1761_v18 = vadd.f32 %v1760_v16, %v1759_v13 }
 0x17c   :  { %v1187_v19 = vadd.f32 %v1186_v4, %v968_v17  ;;  %v1226_v20 = vmul.f32 %v968_v17, %v968_v17  ;;  %v971_v21 = vadd.f32 %v1761_v18, %v1649_v15 }
 0x17d   :  { %v1650_v22 = vpop.f32.mrb[48].mxu0 }
 0x17e   :  { %v1257_v23 = vadd.f32 %v1256_v11, %v1226_v20  ;;  %v1525_v24 = vpack.c.bf16 %v971_v21, %v968_v17  ;;  %v1188_v25 = vadd.f32 %v1187_v19, %v971_v21  ;;  %v1227_v26 = vmul.f32 %v971_v21, %v971_v21  ;;  %v1762_v27 = vpop.f32.mrb[48].mxu1  ;;  %v1651_v28 = vpop.f32.mrb[49].mxu0 }
 0x17f   :  { %v1652_v29 = vadd.f32 %v1651_v28, %v1650_v22  ;;  %v1763_v30 = vpop.f32.mrb[49].mxu1  ;;  %v1653_v31 = vpop.f32.mrb[50].mxu0 }
 0x180   :  { %1557 = vst [vmem:[#allocation7 + $0x58] sm:$0xff] %v1525_v24   ;;  %v1258_v32 = vadd.f32 %v1257_v23, %v1227_v26  ;;  %v1764_v33 = vadd.f32 %v1763_v30, %v1762_v27  ;;  %v1765_v34 = vpop.f32.mrb[50].mxu1  ;;  %v1654_v35 = vpop.f32.mrb[51].mxu0 }
 0x181   :  { %v1655_v36 = vadd.f32 %v1654_v35, %v1653_v31  ;;  %v1766_v37 = vpop.f32.mrb[51].mxu1 }
 0x182   :  { %v976_v38 = vadd.f32 %v1764_v33, %v1652_v29  ;;  %v1767_v39 = vadd.f32 %v1766_v37, %v1765_v34 }
 0x184   :  { %v1189_v40 = vadd.f32 %v1188_v25, %v976_v38  ;;  %v1228_v41 = vmul.f32 %v976_v38, %v976_v38  ;;  %v979_v42 = vadd.f32 %v1767_v39, %v1655_v36 }
 0x185   :  { %v1656_v43 = vpop.f32.mrb[52].mxu0 }
 0x186   :  { %v1259_v44 = vadd.f32 %v1258_v32, %v1228_v41  ;;  %v1530_v45 = vpack.c.bf16 %v979_v42, %v976_v38  ;;  %v1190_v46 = vadd.f32 %v1189_v40, %v979_v42  ;;  %v1229_v47 = vmul.f32 %v979_v42, %v979_v42  ;;  %v1768_v48 = vpop.f32.mrb[52].mxu1  ;;  %v1657_v49 = vpop.f32.mrb[53].mxu0 }
 0x187   :  { %v1658_v50 = vadd.f32 %v1657_v49, %v1656_v43  ;;  %v1769_v51 = vpop.f32.mrb[53].mxu1  ;;  %v1659_v52 = vpop.f32.mrb[54].mxu0 }
 0x188   :  { %1558 = vst [vmem:[#allocation7 + $0x60] sm:$0xff] %v1530_v45   ;;  %v1260_v53 = vadd.f32 %v1259_v44, %v1229_v47  ;;  %v1770_v54 = vadd.f32 %v1769_v51, %v1768_v48  ;;  %v1771_v55 = vpop.f32.mrb[54].mxu1  ;;  %v1660_v56 = vpop.f32.mrb[55].mxu0 }
 0x189   :  { %v1661_v57 = vadd.f32 %v1660_v56, %v1659_v52  ;;  %v1772_v58 = vpop.f32.mrb[55].mxu1 }
 0x18a   :  { %v984_v59 = vadd.f32 %v1770_v54, %v1658_v50  ;;  %v1773_v60 = vadd.f32 %v1772_v58, %v1771_v55 }
 0x18c   :  { %v1191_v61 = vadd.f32 %v1190_v46, %v984_v59  ;;  %v1230_v62 = vmul.f32 %v984_v59, %v984_v59  ;;  %v987_v63 = vadd.f32 %v1773_v60, %v1661_v57 }
 0x18d   :  { %v1662_v0 = vpop.f32.mrb[56].mxu0 }
 0x18e   :  { %v1261_v1 = vadd.f32 %v1260_v53, %v1230_v62  ;;  %v1535_v2 = vpack.c.bf16 %v987_v63, %v984_v59  ;;  %v1192_v3 = vadd.f32 %v1191_v61, %v987_v63  ;;  %v1231_v4 = vmul.f32 %v987_v63, %v987_v63  ;;  %v1774_v5 = vpop.f32.mrb[56].mxu1  ;;  %v1663_v6 = vpop.f32.mrb[57].mxu0 }
 0x18f   :  { %v1664_v7 = vadd.f32 %v1663_v6, %v1662_v0  ;;  %v1775_v8 = vpop.f32.mrb[57].mxu1  ;;  %v1665_v9 = vpop.f32.mrb[58].mxu0 }
 0x190   :  { %1559 = vst [vmem:[#allocation7 + $0x68] sm:$0xff] %v1535_v2   ;;  %v1262_v10 = vadd.f32 %v1261_v1, %v1231_v4  ;;  %v1776_v11 = vadd.f32 %v1775_v8, %v1774_v5  ;;  %v1777_v12 = vpop.f32.mrb[58].mxu1  ;;  %v1666_v13 = vpop.f32.mrb[59].mxu0 }
 0x191   :  { %v1667_v14 = vadd.f32 %v1666_v13, %v1665_v9  ;;  %v1778_v15 = vpop.f32.mrb[59].mxu1 }
 0x192   :  { %v992_v16 = vadd.f32 %v1776_v11, %v1664_v7  ;;  %v1779_v17 = vadd.f32 %v1778_v15, %v1777_v12 }
 0x194   :  { %v1193_v18 = vadd.f32 %v1192_v3, %v992_v16  ;;  %v1232_v19 = vmul.f32 %v992_v16, %v992_v16  ;;  %v995_v20 = vadd.f32 %v1779_v17, %v1667_v14 }
 0x195   :  { %v1668_v21 = vpop.f32.mrb[60].mxu0 }
 0x196   :  { %v1263_v22 = vadd.f32 %v1262_v10, %v1232_v19  ;;  %v1540_v23 = vpack.c.bf16 %v995_v20, %v992_v16  ;;  %v1194_v24 = vadd.f32 %v1193_v18, %v995_v20  ;;  %v1233_v25 = vmul.f32 %v995_v20, %v995_v20  ;;  %v1780_v26 = vpop.f32.mrb[60].mxu1  ;;  %v1669_v27 = vpop.f32.mrb[61].mxu0 }
 0x197   :  { %v1670_v28 = vadd.f32 %v1669_v27, %v1668_v21  ;;  %v1781_v29 = vpop.f32.mrb[61].mxu1  ;;  %v1671_v30 = vpop.f32.mrb[62].mxu0 }
 0x198   :  { %1560 = vst [vmem:[#allocation7 + $0x70] sm:$0xff] %v1540_v23   ;;  %v1264_v31 = vadd.f32 %v1263_v22, %v1233_v25  ;;  %v1782_v32 = vadd.f32 %v1781_v29, %v1780_v26  ;;  %v1783_v33 = vpop.f32.mrb[62].mxu1  ;;  %v1672_v34 = vpop.f32.mrb[63].mxu0 }
 0x199   :  { %v1673_v35 = vadd.f32 %v1672_v34, %v1671_v30  ;;  %v1784_v36 = vpop.f32.mrb[63].mxu1 }
 0x19a   :  { %v1000_v37 = vadd.f32 %v1782_v32, %v1670_v28  ;;  %v1785_v38 = vadd.f32 %v1784_v36, %v1783_v33 }
 0x19c   :  { %v1195_v39 = vadd.f32 %v1194_v24, %v1000_v37  ;;  %v1234_v40 = vmul.f32 %v1000_v37, %v1000_v37  ;;  %v1003_v41 = vadd.f32 %v1785_v38, %v1673_v35 }
 0x19e   :  { %v1265_v42 = vadd.f32 %v1264_v31, %v1234_v40  ;;  %v1545_v43 = vpack.c.bf16 %v1003_v41, %v1000_v37  ;;  %v1196_v44 = vadd.f32 %v1195_v39, %v1003_v41  ;;  %v1235_v45 = vmul.f32 %v1003_v41, %v1003_v41 }
 0x1a0   :  { %1561 = vst [vmem:[#allocation7 + $0x78] sm:$0xff] %v1545_v43   ;;  %v1197_v46 = vrot.slane %v1196_v44, 4  ;;  %v1266_v47 = vadd.f32 %v1265_v42, %v1235_v45 }
 0x1a1   :  { %1978 = shalt.err (!%p1975_p6)
}
 0x1a2   :  { %s1979_s16 = scalar_lea.hbm %s2104_s2, 2048 }
 0x1a3   :  { %p1980_p7 = scmp.ne.s32.totalorder %s2104_s2, %s1979_s16  ;;  %p1983_p8 = scmp.lt.u32.totalorder %s1979_s16, %s2104_s2 }
 0x1a5   :  { %p1985_p9 = pnand %p1983_p8, %p1980_p7 }
 0x1a7   :  { %1988 = shalt.err (!%p1985_p9)
}
 0x1a8   :  { %1286 = dma.vmem_to_hbm [thread:$0]  %s1281_s12, 2048, %s2104_s2, [#allocation4], %s2023_s0, %s2023_s0, %s2024_s9   ;;  %v1198_v48 = vadd.f32 %v1197_v46, %v1196_v44  ;;  %v1267_v49 = vrot.slane %v1266_v47, 4 }
 0x1a9   :  { %s2027_s23 = smov [#allocation8]  }
 0x1aa   :  { %v1199_v50 = vrot.slane %v1198_v48, 2  ;;  %v1268_v51 = vadd.f32 %v1267_v49, %v1266_v47  ;;  %s1293_s24 = sshll.u32 %s2027_s23, 4  ;;  %s1294_s24 = int_to_ptr.vmem [resolvable:$true] %s1293_s24 }
 0x1ab   :  { %s1989_s25 = scalar_lea.vmem %s1294_s24, 128  ;;  %p1994_p11 = scmp.lt.s32.totalorder %s1294_s24, %s1294_s24 }
 0x1ac   :  { %v1200_v52 = vadd.f32 %v1199_v50, %v1198_v48  ;;  %v1269_v53 = vrot.slane %v1268_v51, 2  ;;  %p1990_p10 = scmp.ne.s32.totalorder %s1294_s24, %s1989_s25  ;;  %p1995_p12 = scmp.lt.s32.totalorder %s1989_s25, %s1989_s25 }
 0x1ae   :  { %v1201_v54 = vrot.slane %v1200_v52, 1  ;;  %v1270_v55 = vadd.f32 %v1269_v53, %v1268_v51  ;;  %p1996_p13 = por %p1995_p12, %p1994_p11 }
 0x1b0   :  { %v1202_v56 = vadd.f32 %v1201_v54, %v1200_v52  ;;  %v1271_v57 = vrot.slane %v1270_v55, 1  ;;  %p1997_p0 = pnand %p1996_p13, %p1990_p10 }
 0x1b2   :  { %1203 = vst [vmem:[#allocation8] sm:$0x1] %v1202_v56  ;;  %v1272_v58 = vadd.f32 %v1271_v57, %v1270_v55 }
 0x1b4   :  { %1273 = vst [vmem:[#allocation8 + $0x1] sm:$0x1] %v1272_v58 }
 0x1b5   :  { %2000 = shalt.err (!%p1997_p0)
}
 0x1b6   :  { %s2001_s27 = scalar_lea.hbm %s2105_s3, 128 }
 0x1b7   :  { %p2002_p1 = scmp.ne.s32.totalorder %s2105_s3, %s2001_s27  ;;  %p2005_p2 = scmp.lt.u32.totalorder %s2001_s27, %s2105_s3 }
 0x1b9   :  { %p2007_p3 = pnand %p2005_p2, %p2002_p1 }
 0x1bb   :  { %2010 = shalt.err (!%p2007_p3)
}
 0x1bc   :  { %1296 = dma.vmem_to_hbm [thread:$0]  %s1294_s24, 128, %s2105_s3, [#allocation9]  }
 0x1bd   :  { %2015 = dma.done.wait [#allocation4], 2048  }
 0x1be   :  { %2016 = vsyncadd [#allocation4], 4294965248 }
 0x1bf   :  { %2017 = dma.done.wait [#allocation9], 128  }
 0x1c0   :  { %2018 = vsyncadd [#allocation9], 4294967168 }
 0x1c1   :  { %1303 = vsyncpa [#allocation3], 1 }
 0x1c2   :  { %1304 = vsyncpa [#allocation6], 1 }
 0x1c3   :  { %1305 = vsyncpa [#allocation4], 1 }
 0x1c4   :  { %1306 = vsyncpa [#allocation9], 1 }

</bundles_post_ra>
